<compile_context>
chip_gen: v7x
topology: tpu7x:2x2x1
jax: 0.10.0
libtpu: 0.0.40
codegen_flags: <defaults>
</compile_context>

<pallas_src>
import math
from functools import partial

import jax
import jax.numpy as jnp
from jax import lax
from jax.experimental import pallas as pl
from jax.experimental.pallas import tpu as pltpu

_CLAMP = 1e-15
_LOG_CLAMP = math.log(_CLAMP)


def _stable_softplus(v):
    # Matches torch.log1p(torch.exp(v)) for ordinary values but does not
    # overflow for large v (thresholded like F.softplus).
    safe = jnp.minimum(v, 20.0)
    return jnp.where(v > 20.0, v, jnp.log(1.0 + jnp.exp(safe)))


def dp_loss_kernel(x_ref, y_ref, mu_x_ref, mu_y_ref, lcx_ref, lcy_ref, beta_ref,
                   loss_ref, phi_ref, g1_ref, g2_ref, *, eta):
    f32 = jnp.float32
    x = x_ref[...].astype(f32)          # (B, D)
    y = y_ref[...].astype(f32)          # (B, D)
    mu_x = mu_x_ref[...].astype(f32)    # (K, D)
    mu_y = mu_y_ref[...].astype(f32)    # (K, D)
    beta = beta_ref[...].astype(f32)    # (B, n_mix)

    K, D = mu_x.shape
    n_mix = beta.shape[1]               # == 2*K

    # cov (std-dev) = clamp(softplus(log_cov), 1e-15);  w = 1 / cov^2
    cov_x = jnp.maximum(_stable_softplus(lcx_ref[...].astype(f32)), _CLAMP)
    cov_y = jnp.maximum(_stable_softplus(lcy_ref[...].astype(f32)), _CLAMP)
    w_x = 1.0 / (cov_x * cov_x)         # (K, D)
    w_y = 1.0 / (cov_y * cov_y)         # (K, D)

    # ---- fused quadratic forms -------------------------------------------
    # For a diagonal MVN:  log_pdf(x) + entropy = -0.5*sum_d((x_d-mu_d)/cov_d)^2 + D/2
    # so only the quadratic form matters.  Expand it and compute it as a single
    # (B, 4D) x (2K, 4D)^T MXU contraction + one parameter-only contraction.
    lhs = jnp.concatenate([x * x, x, y * y, y], axis=1)               # (B, 4D)
    zeros_k2d = jnp.zeros((K, 2 * D), f32)
    rhs = jnp.concatenate(
        [jnp.concatenate([w_x, -2.0 * mu_x * w_x, zeros_k2d], axis=1),
         jnp.concatenate([zeros_k2d, w_y, -2.0 * mu_y * w_y], axis=1)],
        axis=0)                                                        # (2K, 4D)
    contract_t = (((1,), (1,)), ((), ()))        # contract last dims (A @ B^T)
    quad = lax.dot_general(lhs, rhs, contract_t,
                           preferred_element_type=f32)                 # (B, 2K)

    m2w = jnp.concatenate([mu_x * mu_x * w_x, mu_y * mu_y * w_y], axis=0)  # (2K, D)
    ones_row = jnp.ones((1, D), f32)
    mu2w = lax.dot_general(ones_row, m2w, contract_t,
                           preferred_element_type=f32)                 # (1, 2K)

    # ---- stick-breaking mixture weights in log domain ----------------------
    # log pi[:, j] = log beta[:, j] + sum_{l<j} log(1 - beta[:, l]); the
    # exclusive prefix sum is a tiny matmul against a strictly-lower mask.
    row_i = lax.broadcasted_iota(jnp.int32, (n_mix, n_mix), 0)
    col_i = lax.broadcasted_iota(jnp.int32, (n_mix, n_mix), 1)
    strict_lower = (row_i < col_i).astype(f32)                         # [l, j] = (l < j)
    log_beta = jnp.log(jnp.maximum(beta, 1e-30))
    log_1m_beta = jnp.log(jnp.maximum(1.0 - beta, 1e-30))
    contract_n = (((1,), (0,)), ((), ()))
    prefix = lax.dot_general(log_1m_beta, strict_lower, contract_n,
                             preferred_element_type=f32)               # (B, n_mix)
    log_pi = jnp.maximum(log_beta + prefix, _LOG_CLAMP)                # == log(clamp(pi, 1e-15))

    # ---- loss matrix, softmax (phi), logsumexp ------------------------------
    loss_mat = -0.5 * (quad + mu2w) + 0.5 * D + log_pi                 # (B, 2K)

    m = jnp.max(loss_mat, axis=-1, keepdims=True)                      # (B, 1)
    e = jnp.exp(loss_mat - m)
    s = jnp.sum(e, axis=-1, keepdims=True)                             # (B, 1)
    phi = jnp.maximum(e * pl.reciprocal(s, approx=True), _CLAMP)       # (B, 2K)
    phi_ref[...] = phi.astype(phi_ref.dtype)

    lse = m + jnp.log(s)                                               # (B, 1)
    loss_ref[...] = (-jnp.mean(lse, axis=0, keepdims=True)).astype(loss_ref.dtype)

    # ---- gamma statistics (the _update_gamma side effect) -------------------
    phi_mean = jnp.mean(phi, axis=0, keepdims=True)                    # (1, n_mix)
    prefix_mean = lax.dot_general(phi_mean, strict_lower, contract_n,
                                  preferred_element_type=f32)          # sum_{l<j}
    total = jnp.sum(phi_mean, axis=-1, keepdims=True)                  # (1, 1)
    suffix_mean = total - prefix_mean - phi_mean                       # sum_{l>j}
    g1_ref[...] = (1.0 + phi_mean).astype(g1_ref.dtype)
    g2_ref[...] = (eta + suffix_mean).astype(g2_ref.dtype)


def dp_loss_pallas(x, y, mu_x, mu_y, log_cov_x, log_cov_y, beta_samples, eta=1.0):
    """Returns (-loss, phi, new_gamma_1, new_gamma_2) — the forward return value
    plus the self.phi / gamma side effects of the torch module."""
    B, D = x.shape
    K = mu_x.shape[0]
    n_mix = beta_samples.shape[1]
    assert n_mix == 2 * K

    kernel = partial(dp_loss_kernel, eta=float(eta))
    loss, phi, g1, g2 = pl.pallas_call(
        kernel,
        grid=(1,),
        in_specs=[
            pl.BlockSpec((B, D), lambda i: (0, 0)),
            pl.BlockSpec((B, D), lambda i: (0, 0)),
            pl.BlockSpec((K, D), lambda i: (0, 0)),
            pl.BlockSpec((K, D), lambda i: (0, 0)),
            pl.BlockSpec((K, D), lambda i: (0, 0)),
            pl.BlockSpec((K, D), lambda i: (0, 0)),
            pl.BlockSpec((B, n_mix), lambda i: (0, 0)),
        ],
        out_specs=(
            pl.BlockSpec((1, 1), lambda i: (0, 0)),
            pl.BlockSpec((B, n_mix), lambda i: (0, 0)),
            pl.BlockSpec((1, n_mix), lambda i: (0, 0)),
            pl.BlockSpec((1, n_mix), lambda i: (0, 0)),
        ),
        out_shape=(
            jax.ShapeDtypeStruct((1, 1), jnp.float32),
            jax.ShapeDtypeStruct((B, n_mix), jnp.float32),
            jax.ShapeDtypeStruct((1, n_mix), jnp.float32),
            jax.ShapeDtypeStruct((1, n_mix), jnp.float32),
        ),
        compiler_params=pltpu.CompilerParams(
            dimension_semantics=("arbitrary",)),
    )(x, y, mu_x, mu_y, log_cov_x, log_cov_y, beta_samples)
    return loss[0, 0], phi, g1[0], g2[0]


def reference_forward(x, y, params, beta_samples, eta=1.0):
    """Plain-JAX mirror of DirichletProcessLoss.forward (given the Beta draws)."""
    D = x.shape[-1]
    K = params["mu_x"].shape[0]
    log2pi = math.log(2.0 * math.pi)

    cov_x = jnp.maximum(jnp.log1p(jnp.exp(params["log_cov_x"])), 1e-15)
    cov_y = jnp.maximum(jnp.log1p(jnp.exp(params["log_cov_y"])), 1e-15)

    def mvn_log_pdf(data, mu, cov):
        z = (data - mu) / cov
        return (-0.5 * jnp.sum(z * z, axis=-1) - jnp.sum(jnp.log(cov))
                - 0.5 * D * log2pi)

    def mvn_entropy(cov):
        return 0.5 * D * (1.0 + log2pi) + jnp.sum(jnp.log(cov))

    beta1m_cumprod = jnp.cumprod(1.0 - beta_samples, axis=-1)
    pi_full = (jnp.pad(beta_samples, ((0, 0), (0, 1)), constant_values=1.0)
               * jnp.pad(beta1m_cumprod, ((0, 0), (1, 0)), constant_values=1.0))
    pi = pi_full[:, :-1]

    log_pdf = jnp.stack(
        [mvn_log_pdf(x, params["mu_x"][k], cov_x[k]) for k in range(K)]
        + [mvn_log_pdf(y, params["mu_y"][k], cov_y[k]) for k in range(K)], axis=1)
    entropy = jnp.stack(
        [mvn_entropy(cov_x[k]) for k in range(K)]
        + [mvn_entropy(cov_y[k]) for k in range(K)], axis=0)

    loss_mat = log_pdf + entropy[None, :] + jnp.log(jnp.maximum(pi, 1e-15))
    phi = jnp.maximum(jax.nn.softmax(loss_mat, axis=-1), 1e-15)
    loss = jax.scipy.special.logsumexp(loss_mat, axis=-1).mean()

    phi_flipped = jnp.flip(phi, axis=1)
    cum_sum = jnp.flip(jnp.cumsum(phi_flipped, axis=1) - phi_flipped, axis=1)
    gamma_1 = 1.0 + phi.mean(0)
    gamma_2 = eta + cum_sum.mean(0)
    return -loss, phi, gamma_1, gamma_2


if __name__ == "__main__":
    # Small shapes consistent with the module: dim=32, K=3, M=2, batch=8.
    dim, K, M = 32, 3, 2
    rho_scale, eta = -4.0, 1.0
    B = 8
    n_mix = K * M

    key = jax.random.PRNGKey(0)
    kx, ky, kb = jax.random.split(key, 3)

    x = jax.random.normal(kx, (B, dim), jnp.float32)
    y = jax.random.normal(ky, (B, dim), jnp.float32)

    # Deterministic parameter init, matching the module's __init__.
    params = {
        "mu_x": jnp.zeros((K, dim), jnp.float32),
        "mu_y": jnp.zeros((K, dim), jnp.float32),
        "log_cov_x": jnp.full((K, dim), rho_scale, jnp.float32),
        "log_cov_y": jnp.full((K, dim), rho_scale, jnp.float32),
    }
    gamma_1 = jnp.ones((n_mix,), jnp.float32)
    gamma_2 = jnp.ones((n_mix,), jnp.float32) * eta

    # sample_beta: Beta(gamma_1, gamma_2) draws (the torch module uses scipy's
    # beta.rvs; here jax.random.beta so the script is deterministic).
    beta_samples = jax.random.beta(
        kb, gamma_1[None, :], gamma_2[None, :], (B, n_mix)).astype(jnp.float32)

    neg_loss, phi, new_g1, new_g2 = dp_loss_pallas(
        x, y, params["mu_x"], params["mu_y"],
        params["log_cov_x"], params["log_cov_y"], beta_samples, eta=eta)
    jax.block_until_ready((neg_loss, phi, new_g1, new_g2))

    # Sanity checks against a pure-JAX reference + structural invariants.
    ref_neg_loss, ref_phi, ref_g1, ref_g2 = reference_forward(
        x, y, params, beta_samples, eta=eta)

    assert neg_loss.shape == () and phi.shape == (B, n_mix)
    assert new_g1.shape == (n_mix,) and new_g2.shape == (n_mix,)
    assert bool(jnp.isfinite(neg_loss))
    assert bool(jnp.all(jnp.isfinite(phi)))
    assert bool(jnp.all(jnp.isfinite(new_g1))) and bool(jnp.all(jnp.isfinite(new_g2)))
    # softmax rows sum to ~1 (approx reciprocal + clamp -> loose tolerance)
    assert bool(jnp.all(jnp.abs(jnp.sum(phi, axis=-1) - 1.0) < 2e-2))
    # gamma invariants: phi.mean in [0,1], suffix sums nonnegative
    assert bool(jnp.all(new_g1 >= 1.0 - 1e-5)) and bool(jnp.all(new_g1 <= 2.0 + 1e-5))
    assert bool(jnp.all(new_g2 >= eta - 1e-5))
    # loss agrees with the reference (loose tol to cover MXU f32 rounding)
    assert bool(jnp.abs(neg_loss - ref_neg_loss)
                <= 2e-2 * jnp.abs(ref_neg_loss) + 1e-2)

    print("KERNEL_OK")
</pallas_src>

<mosaic_0001>
module attributes {stable_mosaic.version = 11 : i64} {
  func.func @dp_loss_kernel(%arg0: i32, %arg1: memref<8x32xf32, #tpu.memory_space<vmem>>, %arg2: memref<8x32xf32, #tpu.memory_space<vmem>>, %arg3: memref<3x32xf32, #tpu.memory_space<vmem>>, %arg4: memref<3x32xf32, #tpu.memory_space<vmem>>, %arg5: memref<3x32xf32, #tpu.memory_space<vmem>>, %arg6: memref<3x32xf32, #tpu.memory_space<vmem>>, %arg7: memref<8x6xf32, #tpu.memory_space<vmem>>, %arg8: memref<1x1xf32, #tpu.memory_space<vmem>>, %arg9: memref<8x6xf32, #tpu.memory_space<vmem>>, %arg10: memref<1x6xf32, #tpu.memory_space<vmem>>, %arg11: memref<1x6xf32, #tpu.memory_space<vmem>>) attributes {dimension_semantics = [#tpu.dimension_semantics<arbitrary>], iteration_bounds = array<i64: 1>, scalar_prefetch = 0 : i64, scratch_operands = 0 : i64, tpu.core_type = #tpu.core_type<tc>, window_params = [{pipeline_mode = #tpu.pipeline_mode<synchronous>, transform_indices = @transform_0, window_bounds = array<i64: 8, 32>}, {pipeline_mode = #tpu.pipeline_mode<synchronous>, transform_indices = @transform_1, window_bounds = array<i64: 8, 32>}, {pipeline_mode = #tpu.pipeline_mode<synchronous>, transform_indices = @transform_2, window_bounds = array<i64: 3, 32>}, {pipeline_mode = #tpu.pipeline_mode<synchronous>, transform_indices = @transform_3, window_bounds = array<i64: 3, 32>}, {pipeline_mode = #tpu.pipeline_mode<synchronous>, transform_indices = @transform_4, window_bounds = array<i64: 3, 32>}, {pipeline_mode = #tpu.pipeline_mode<synchronous>, transform_indices = @transform_5, window_bounds = array<i64: 3, 32>}, {pipeline_mode = #tpu.pipeline_mode<synchronous>, transform_indices = @transform_6, window_bounds = array<i64: 8, 6>}, {pipeline_mode = #tpu.pipeline_mode<synchronous>, transform_indices = @transform_7, window_bounds = array<i64: 1, 1>}, {pipeline_mode = #tpu.pipeline_mode<synchronous>, transform_indices = @transform_8, window_bounds = array<i64: 8, 6>}, {pipeline_mode = #tpu.pipeline_mode<synchronous>, transform_indices = @transform_9, window_bounds = array<i64: 1, 6>}, {pipeline_mode = #tpu.pipeline_mode<synchronous>, transform_indices = @transform_10, window_bounds = array<i64: 1, 6>}]} {
    %c0 = arith.constant 0 : index
    %c0_0 = arith.constant 0 : index
    %0 = vector.load %arg1[%c0, %c0_0] : memref<8x32xf32, #tpu.memory_space<vmem>>, vector<8x32xf32>
    %c0_1 = arith.constant 0 : index
    %c0_2 = arith.constant 0 : index
    %1 = vector.load %arg2[%c0_1, %c0_2] : memref<8x32xf32, #tpu.memory_space<vmem>>, vector<8x32xf32>
    %c0_3 = arith.constant 0 : index
    %c0_4 = arith.constant 0 : index
    %2 = vector.load %arg3[%c0_3, %c0_4] : memref<3x32xf32, #tpu.memory_space<vmem>>, vector<3x32xf32>
    %c0_5 = arith.constant 0 : index
    %c0_6 = arith.constant 0 : index
    %3 = vector.load %arg4[%c0_5, %c0_6] : memref<3x32xf32, #tpu.memory_space<vmem>>, vector<3x32xf32>
    %c0_7 = arith.constant 0 : index
    %c0_8 = arith.constant 0 : index
    %4 = vector.load %arg7[%c0_7, %c0_8] : memref<8x6xf32, #tpu.memory_space<vmem>>, vector<8x6xf32>
    %c0_9 = arith.constant 0 : index
    %c0_10 = arith.constant 0 : index
    %5 = vector.load %arg5[%c0_9, %c0_10] : memref<3x32xf32, #tpu.memory_space<vmem>>, vector<3x32xf32>
    %cst = arith.constant 2.000000e+01 : f32
    %6 = vector.broadcast %cst : f32 to vector<3x32xf32>
    %7 = arith.minimumf %5, %6 : vector<3x32xf32>
    %cst_11 = arith.constant 2.000000e+01 : f32
    %8 = vector.broadcast %cst_11 : f32 to vector<3x32xf32>
    %9 = arith.cmpf ogt, %5, %8 : vector<3x32xf32>
    %10 = math.exp %7 : vector<3x32xf32>
    %cst_12 = arith.constant 1.000000e+00 : f32
    %11 = vector.broadcast %cst_12 : f32 to vector<3x32xf32>
    %12 = arith.addf %11, %10 : vector<3x32xf32>
    %13 = math.log %12 : vector<3x32xf32>
    %14 = arith.select %9, %5, %13 : vector<3x32xi1>, vector<3x32xf32>
    %cst_13 = arith.constant 1.000000e-15 : f32
    %15 = vector.broadcast %cst_13 : f32 to vector<3x32xf32>
    %16 = arith.maximumf %14, %15 : vector<3x32xf32>
    %c0_14 = arith.constant 0 : index
    %c0_15 = arith.constant 0 : index
    %17 = vector.load %arg6[%c0_14, %c0_15] : memref<3x32xf32, #tpu.memory_space<vmem>>, vector<3x32xf32>
    %cst_16 = arith.constant 2.000000e+01 : f32
    %18 = vector.broadcast %cst_16 : f32 to vector<3x32xf32>
    %19 = arith.minimumf %17, %18 : vector<3x32xf32>
    %cst_17 = arith.constant 2.000000e+01 : f32
    %20 = vector.broadcast %cst_17 : f32 to vector<3x32xf32>
    %21 = arith.cmpf ogt, %17, %20 : vector<3x32xf32>
    %22 = math.exp %19 : vector<3x32xf32>
    %cst_18 = arith.constant 1.000000e+00 : f32
    %23 = vector.broadcast %cst_18 : f32 to vector<3x32xf32>
    %24 = arith.addf %23, %22 : vector<3x32xf32>
    %25 = math.log %24 : vector<3x32xf32>
    %26 = arith.select %21, %17, %25 : vector<3x32xi1>, vector<3x32xf32>
    %cst_19 = arith.constant 1.000000e-15 : f32
    %27 = vector.broadcast %cst_19 : f32 to vector<3x32xf32>
    %28 = arith.maximumf %26, %27 : vector<3x32xf32>
    %29 = arith.mulf %16, %16 : vector<3x32xf32>
    %cst_20 = arith.constant 1.000000e+00 : f32
    %30 = vector.broadcast %cst_20 : f32 to vector<3x32xf32>
    %31 = arith.divf %30, %29 : vector<3x32xf32>
    %32 = arith.mulf %28, %28 : vector<3x32xf32>
    %cst_21 = arith.constant 1.000000e+00 : f32
    %33 = vector.broadcast %cst_21 : f32 to vector<3x32xf32>
    %34 = arith.divf %33, %32 : vector<3x32xf32>
    %35 = arith.mulf %0, %0 : vector<8x32xf32>
    %36 = arith.mulf %1, %1 : vector<8x32xf32>
    %37 = tpu.concatenate %35, %0, %36, %1 in 1 : vector<8x32xf32>, vector<8x32xf32>, vector<8x32xf32>, vector<8x32xf32> -> vector<8x128xf32>
    %cst_22 = arith.constant 0.000000e+00 : f32
    %38 = vector.broadcast %cst_22 : f32 to vector<3x64xf32>
    %cst_23 = arith.constant -2.000000e+00 : f32
    %39 = vector.broadcast %cst_23 : f32 to vector<3x32xf32>
    %40 = arith.mulf %39, %2 : vector<3x32xf32>
    %41 = arith.mulf %40, %31 : vector<3x32xf32>
    %42 = tpu.concatenate %31, %41, %38 in 1 : vector<3x32xf32>, vector<3x32xf32>, vector<3x64xf32> -> vector<3x128xf32>
    %cst_24 = arith.constant -2.000000e+00 : f32
    %43 = vector.broadcast %cst_24 : f32 to vector<3x32xf32>
    %44 = arith.mulf %43, %3 : vector<3x32xf32>
    %45 = arith.mulf %44, %34 : vector<3x32xf32>
    %46 = tpu.concatenate %38, %34, %45 in 1 : vector<3x64xf32>, vector<3x32xf32>, vector<3x32xf32> -> vector<3x128xf32>
    %47 = tpu.concatenate %42, %46 in 0 : vector<3x128xf32>, vector<3x128xf32> -> vector<6x128xf32>
    %cst_25 = arith.constant dense<0.000000e+00> : vector<8x6xf32>
    %48 = tpu.matmul %37, %47, %cst_25 {dimension_numbers = #tpu.dot_dimension_numbers<[1], [1], [0], [0], [0, 0, 1, 0], [], []>} : vector<8x128xf32>, vector<6x128xf32>, vector<8x6xf32> -> vector<8x6xf32>
    %49 = arith.mulf %2, %2 : vector<3x32xf32>
    %50 = arith.mulf %49, %31 : vector<3x32xf32>
    %51 = arith.mulf %3, %3 : vector<3x32xf32>
    %52 = arith.mulf %51, %34 : vector<3x32xf32>
    %53 = tpu.concatenate %50, %52 in 0 : vector<3x32xf32>, vector<3x32xf32> -> vector<6x32xf32>
    %cst_26 = arith.constant 1.000000e+00 : f32
    %54 = vector.broadcast %cst_26 : f32 to vector<1x32xf32>
    %cst_27 = arith.constant dense<0.000000e+00> : vector<1x6xf32>
    %55 = tpu.matmul %54, %53, %cst_27 {dimension_numbers = #tpu.dot_dimension_numbers<[1], [1], [0], [0], [0, 0, 1, 0], [], []>} : vector<1x32xf32>, vector<6x32xf32>, vector<1x6xf32> -> vector<1x6xf32>
    %56 = tpu.iota {dimensions = array<i32: 0>} : vector<6x6xi32>
    %57 = tpu.iota {dimensions = array<i32: 1>} : vector<6x6xi32>
    %58 = arith.cmpi slt, %56, %57 : vector<6x6xi32>
    %59 = arith.extui %58 : vector<6x6xi1> to vector<6x6xi32>
    %60 = arith.sitofp %59 : vector<6x6xi32> to vector<6x6xf32>
    %cst_28 = arith.constant 1.000000e-30 : f32
    %61 = vector.broadcast %cst_28 : f32 to vector<8x6xf32>
    %62 = arith.maximumf %4, %61 : vector<8x6xf32>
    %63 = math.log %62 : vector<8x6xf32>
    %cst_29 = arith.constant 1.000000e+00 : f32
    %64 = vector.broadcast %cst_29 : f32 to vector<8x6xf32>
    %65 = arith.subf %64, %4 : vector<8x6xf32>
    %cst_30 = arith.constant 1.000000e-30 : f32
    %66 = vector.broadcast %cst_30 : f32 to vector<8x6xf32>
    %67 = arith.maximumf %65, %66 : vector<8x6xf32>
    %68 = math.log %67 : vector<8x6xf32>
    %cst_31 = arith.constant dense<0.000000e+00> : vector<8x6xf32>
    %69 = tpu.matmul %68, %60, %cst_31 {dimension_numbers = #tpu.dot_dimension_numbers<[1], [0], [0], [1], [0, 0, 1, 1], [], []>} : vector<8x6xf32>, vector<6x6xf32>, vector<8x6xf32> -> vector<8x6xf32>
    %70 = arith.addf %63, %69 : vector<8x6xf32>
    %cst_32 = arith.constant -34.5387764 : f32
    %71 = vector.broadcast %cst_32 : f32 to vector<8x6xf32>
    %72 = arith.maximumf %70, %71 : vector<8x6xf32>
    %73 = vector.broadcast %55 : vector<1x6xf32> to vector<8x6xf32>
    %74 = arith.addf %48, %73 : vector<8x6xf32>
    %cst_33 = arith.constant -5.000000e-01 : f32
    %75 = vector.broadcast %cst_33 : f32 to vector<8x6xf32>
    %76 = arith.mulf %75, %74 : vector<8x6xf32>
    %cst_34 = arith.constant 1.600000e+01 : f32
    %77 = vector.broadcast %cst_34 : f32 to vector<8x6xf32>
    %78 = arith.addf %76, %77 : vector<8x6xf32>
    %79 = arith.addf %78, %72 : vector<8x6xf32>
    %cst_35 = arith.constant dense<0xFF800000> : vector<8xf32>
    %80 = vector.multi_reduction <maximumf>, %79, %cst_35 [1] : vector<8x6xf32> to vector<8xf32>
    %81 = vector.shape_cast %80 : vector<8xf32> to vector<8x1xf32>
    %82 = vector.broadcast %81 : vector<8x1xf32> to vector<8x6xf32>
    %83 = arith.subf %79, %82 : vector<8x6xf32>
    %84 = math.exp %83 : vector<8x6xf32>
    %cst_36 = arith.constant dense<0.000000e+00> : vector<8xf32>
    %85 = vector.multi_reduction <add>, %84, %cst_36 [1] : vector<8x6xf32> to vector<8xf32>
    %86 = vector.shape_cast %85 : vector<8xf32> to vector<8x1xf32>
    %87 = tpu.reciprocal %86 {approx = true} : vector<8x1xf32> -> vector<8x1xf32>
    %88 = vector.broadcast %87 : vector<8x1xf32> to vector<8x6xf32>
    %89 = arith.mulf %84, %88 : vector<8x6xf32>
    %cst_37 = arith.constant 1.000000e-15 : f32
    %90 = vector.broadcast %cst_37 : f32 to vector<8x6xf32>
    %91 = arith.maximumf %89, %90 : vector<8x6xf32>
    %c0_38 = arith.constant 0 : index
    %c0_39 = arith.constant 0 : index
    %92 = vector.load %arg9[%c0_38, %c0_39] : memref<8x6xf32, #tpu.memory_space<vmem>>, vector<8x6xf32>
    tpu.vector_store %arg9[%c0_38, %c0_39], %91 {strides = array<i32>} : memref<8x6xf32, #tpu.memory_space<vmem>>, vector<8x6xf32>,
    %93 = math.log %86 : vector<8x1xf32>
    %94 = arith.addf %81, %93 : vector<8x1xf32>
    %cst_40 = arith.constant dense<0.000000e+00> : vector<1xf32>
    %95 = vector.multi_reduction <add>, %94, %cst_40 [0] : vector<8x1xf32> to vector<1xf32>
    %96 = vector.shape_cast %95 : vector<1xf32> to vector<1x1xf32>
    %cst_41 = arith.constant 8.000000e+00 : f32
    %97 = vector.broadcast %cst_41 : f32 to vector<1x1xf32>
    %98 = arith.divf %96, %97 : vector<1x1xf32>
    %cst_42 = arith.constant 0.000000e+00 : f32
    %99 = vector.broadcast %cst_42 : f32 to vector<1x1xf32>
    %100 = arith.subf %99, %98 : vector<1x1xf32>
    %c0_43 = arith.constant 0 : index
    %c0_44 = arith.constant 0 : index
    %101 = vector.load %arg8[%c0_43, %c0_44] : memref<1x1xf32, #tpu.memory_space<vmem>>, vector<1x1xf32>
    tpu.vector_store %arg8[%c0_43, %c0_44], %100 {strides = array<i32>} : memref<1x1xf32, #tpu.memory_space<vmem>>, vector<1x1xf32>,
    %cst_45 = arith.constant dense<0.000000e+00> : vector<6xf32>
    %102 = vector.multi_reduction <add>, %91, %cst_45 [0] : vector<8x6xf32> to vector<6xf32>
    %103 = vector.shape_cast %102 : vector<6xf32> to vector<1x6xf32>
    %cst_46 = arith.constant 8.000000e+00 : f32
    %104 = vector.broadcast %cst_46 : f32 to vector<1x6xf32>
    %105 = arith.divf %103, %104 : vector<1x6xf32>
    %cst_47 = arith.constant dense<0.000000e+00> : vector<1x6xf32>
    %106 = tpu.matmul %105, %60, %cst_47 {dimension_numbers = #tpu.dot_dimension_numbers<[1], [0], [0], [1], [0, 0, 1, 1], [], []>} : vector<1x6xf32>, vector<6x6xf32>, vector<1x6xf32> -> vector<1x6xf32>
    %cst_48 = arith.constant dense<0.000000e+00> : vector<1xf32>
    %107 = vector.multi_reduction <add>, %105, %cst_48 [1] : vector<1x6xf32> to vector<1xf32>
    %108 = vector.shape_cast %107 : vector<1xf32> to vector<1x1xf32>
    %109 = vector.broadcast %108 : vector<1x1xf32> to vector<1x6xf32>
    %110 = arith.subf %109, %106 : vector<1x6xf32>
    %111 = arith.subf %110, %105 : vector<1x6xf32>
    %cst_49 = arith.constant 1.000000e+00 : f32
    %112 = vector.broadcast %cst_49 : f32 to vector<1x6xf32>
    %113 = arith.addf %112, %105 : vector<1x6xf32>
    %c0_50 = arith.constant 0 : index
    %c0_51 = arith.constant 0 : index
    %114 = vector.load %arg10[%c0_50, %c0_51] : memref<1x6xf32, #tpu.memory_space<vmem>>, vector<1x6xf32>
    tpu.vector_store %arg10[%c0_50, %c0_51], %113 {strides = array<i32>} : memref<1x6xf32, #tpu.memory_space<vmem>>, vector<1x6xf32>,
    %cst_52 = arith.constant 1.000000e+00 : f32
    %115 = vector.broadcast %cst_52 : f32 to vector<1x6xf32>
    %116 = arith.addf %115, %111 : vector<1x6xf32>
    %c0_53 = arith.constant 0 : index
    %c0_54 = arith.constant 0 : index
    %117 = vector.load %arg11[%c0_53, %c0_54] : memref<1x6xf32, #tpu.memory_space<vmem>>, vector<1x6xf32>
    tpu.vector_store %arg11[%c0_53, %c0_54], %116 {strides = array<i32>} : memref<1x6xf32, #tpu.memory_space<vmem>>, vector<1x6xf32>,
    return
  }
  func.func @transform_0(%arg0: i32) -> (i32, i32) {
    %c0_i32 = arith.constant 0 : i32
    %c0_i32_0 = arith.constant 0 : i32
    %c0_i32_1 = arith.constant 0 : i32
    return %c0_i32, %c0_i32_0 : i32, i32
  }
  func.func @transform_1(%arg0: i32) -> (i32, i32) {
    %c0_i32 = arith.constant 0 : i32
    %c0_i32_0 = arith.constant 0 : i32
    %c0_i32_1 = arith.constant 0 : i32
    return %c0_i32, %c0_i32_0 : i32, i32
  }
  func.func @transform_2(%arg0: i32) -> (i32, i32) {
    %c0_i32 = arith.constant 0 : i32
    %c0_i32_0 = arith.constant 0 : i32
    %c0_i32_1 = arith.constant 0 : i32
    return %c0_i32, %c0_i32_0 : i32, i32
  }
  func.func @transform_3(%arg0: i32) -> (i32, i32) {
    %c0_i32 = arith.constant 0 : i32
    %c0_i32_0 = arith.constant 0 : i32
    %c0_i32_1 = arith.constant 0 : i32
    return %c0_i32, %c0_i32_0 : i32, i32
  }
  func.func @transform_4(%arg0: i32) -> (i32, i32) {
    %c0_i32 = arith.constant 0 : i32
    %c0_i32_0 = arith.constant 0 : i32
    %c0_i32_1 = arith.constant 0 : i32
    return %c0_i32, %c0_i32_0 : i32, i32
  }
  func.func @transform_5(%arg0: i32) -> (i32, i32) {
    %c0_i32 = arith.constant 0 : i32
    %c0_i32_0 = arith.constant 0 : i32
    %c0_i32_1 = arith.constant 0 : i32
    return %c0_i32, %c0_i32_0 : i32, i32
  }
  func.func @transform_6(%arg0: i32) -> (i32, i32) {
    %c0_i32 = arith.constant 0 : i32
    %c0_i32_0 = arith.constant 0 : i32
    %c0_i32_1 = arith.constant 0 : i32
    return %c0_i32, %c0_i32_0 : i32, i32
  }
  func.func @transform_7(%arg0: i32) -> (i32, i32) {
    %c0_i32 = arith.constant 0 : i32
    %c0_i32_0 = arith.constant 0 : i32
    %c0_i32_1 = arith.constant 0 : i32
    return %c0_i32, %c0_i32_0 : i32, i32
  }
  func.func @transform_8(%arg0: i32) -> (i32, i32) {
    %c0_i32 = arith.constant 0 : i32
    %c0_i32_0 = arith.constant 0 : i32
    %c0_i32_1 = arith.constant 0 : i32
    return %c0_i32, %c0_i32_0 : i32, i32
  }
  func.func @transform_9(%arg0: i32) -> (i32, i32) {
    %c0_i32 = arith.constant 0 : i32
    %c0_i32_0 = arith.constant 0 : i32
    %c0_i32_1 = arith.constant 0 : i32
    return %c0_i32, %c0_i32_0 : i32, i32
  }
  func.func @transform_10(%arg0: i32) -> (i32, i32) {
    %c0_i32 = arith.constant 0 : i32
    %c0_i32_0 = arith.constant 0 : i32
    %c0_i32_1 = arith.constant 0 : i32
    return %c0_i32, %c0_i32_0 : i32, i32
  }
}

</mosaic_0001>

<bundles_post_ra>
// kernel: tpu_custom_call.1
= control target key start
LH: loop header
LB: loop body
LE: loop exit
PB: predicated region body
PF: predicated region fallthrough
CT: control target
= control target key end

     0   :  { %16 = vsyncpa [#allocation3], 0  ;;  %s1057_s0 = inlined_call_operand.hbm [shape: f32[8,32], index: 0, kind: input, shape index: {}]   ;;  %s1058_s1 = inlined_call_operand.hbm [shape: f32[8,32], index: 1, kind: input, shape index: {}]   ;;  %s1059_s2 = inlined_call_operand.vmem [shape: f32[3,32], index: 2, kind: input, shape index: {}]   ;;  %s1060_s3 = inlined_call_operand.hbm [shape: f32[3,32], index: 3, kind: input, shape index: {}]   ;;  %s1061_s4 = inlined_call_operand.hbm [shape: f32[3,32], index: 4, kind: input, shape index: {}]   ;;  %s1062_s5 = inlined_call_operand.vmem [shape: f32[3,32], index: 5, kind: input, shape index: {}]   ;;  %s1063_s6 = inlined_call_operand.vmem [shape: f32[8,6], index: 6, kind: input, shape index: {}]   ;;  %s1064_s7 = inlined_call_operand.hbm [shape: f32[1,1], index: 7, kind: output, shape index: {0}]   ;;  %s1065_s8 = inlined_call_operand.hbm [shape: f32[8,6], index: 8, kind: output, shape index: {1}]   ;;  %s1066_s9 = inlined_call_operand.hbm [shape: f32[1,6], index: 9, kind: output, shape index: {2}]   ;;  %s1067_s10 = inlined_call_operand.hbm [shape: f32[1,6], index: 10, kind: output, shape index: {3}]  }
   0x1   :  { %17 = vsyncpa [#allocation6], 0 }
   0x2   :  { %18 = vsyncpa [#allocation9], 0 }
   0x3   :  { %19 = vsyncpa [#allocation4], 0 }
   0x4   :  { %20 = vsyncpa [#allocation12], 0 }
   0x5   :  { %21 = vsyncpa [#allocation15], 0  ;;  %s846_s13 = smov [#allocation5]   ;;  %s847_s15 = smov [#allocation2]  }
   0x6   :  { %s38_s14 = sshll.u32 %s846_s13, 4  ;;  %s28_s16 = sshll.u32 %s847_s15, 4  ;;  %s39_s14 = int_to_ptr.vmem [resolvable:$true] %s38_s14  ;;  %s29_s16 = int_to_ptr.vmem [resolvable:$true] %s28_s16 }
   0x7   :  { %s658_s19 = scalar_lea.hbm %s1058_s1, 128 }
   0x8   :  { %p659_p0 = scmp.ne.s32.totalorder %s1058_s1, %s658_s19  ;;  %p662_p1 = scmp.lt.u32.totalorder %s658_s19, %s1058_s1 }
   0xa   :  { %p664_p2 = pnand %p662_p1, %p659_p0 }
   0xc   :  { %667 = shalt.err (!%p664_p2)
}
   0xd   :  { %s668_s24 = scalar_lea.vmem %s39_s14, 128  ;;  %p673_p4 = scmp.lt.s32.totalorder %s39_s14, %s39_s14 }
   0xe   :  { %p669_p3 = scmp.ne.s32.totalorder %s39_s14, %s668_s24  ;;  %p674_p5 = scmp.lt.s32.totalorder %s668_s24, %s668_s24 }
  0x10   :  { %p675_p6 = por %p674_p5, %p673_p4 }
  0x12   :  { %p676_p7 = pnand %p675_p6, %p669_p3 }
  0x14   :  { %679 = shalt.err (!%p676_p7)
}
  0x15   :  { %41 = dma.hbm_to_vmem [thread:$0]  %s1058_s1, 128, %s39_s14, [#allocation6]  }
  0x16   :  { %s680_s29 = scalar_lea.hbm %s1057_s0, 128 }
  0x17   :  { %p681_p8 = scmp.ne.s32.totalorder %s1057_s0, %s680_s29  ;;  %p684_p9 = scmp.lt.u32.totalorder %s680_s29, %s1057_s0 }
  0x19   :  { %p686_p10 = pnand %p684_p9, %p681_p8 }
  0x1b   :  { %689 = shalt.err (!%p686_p10)
}
  0x1c   :  { %s690_s15 = scalar_lea.vmem %s29_s16, 128  ;;  %p695_p12 = scmp.lt.s32.totalorder %s29_s16, %s29_s16 }
  0x1d   :  { %p691_p11 = scmp.ne.s32.totalorder %s29_s16, %s690_s15  ;;  %p696_p13 = scmp.lt.s32.totalorder %s690_s15, %s690_s15 }
  0x1f   :  { %p697_p0 = por %p696_p13, %p695_p12 }
  0x21   :  { %p698_p1 = pnand %p697_p0, %p691_p11 }
  0x23   :  { %701 = shalt.err (!%p698_p1)
}
  0x24   :  { %31 = dma.hbm_to_vmem [thread:$0]  %s1057_s0, 128, %s29_s16, [#allocation3]  }
  0x25   :  { %s848_s17 = smov [#allocation7]   ;;  %s849_s19 = smov [#allocation8]  }
  0x26   :  { %s50_s18 = sshll.u32 %s848_s17, 4  ;;  %s60_s20 = sshll.u32 %s849_s19, 4  ;;  %s51_s18 = int_to_ptr.vmem [resolvable:$true] %s50_s18  ;;  %s61_s20 = int_to_ptr.vmem [resolvable:$true] %s60_s20 }
  0x27   :  { %s702_s23 = scalar_lea.hbm %s1060_s3, 64 }
  0x28   :  { %p703_p2 = scmp.ne.s32.totalorder %s1060_s3, %s702_s23  ;;  %p706_p3 = scmp.lt.u32.totalorder %s702_s23, %s1060_s3 }
  0x2a   :  { %p708_p4 = pnand %p706_p3, %p703_p2 }
  0x2c   :  { %711 = shalt.err (!%p708_p4)
}
  0x2d   :  { %s712_s0 = scalar_lea.vmem %s51_s18, 64  ;;  %p717_p6 = scmp.lt.s32.totalorder %s51_s18, %s51_s18 }
  0x2e   :  { %p713_p5 = scmp.ne.s32.totalorder %s51_s18, %s712_s0  ;;  %p718_p7 = scmp.lt.s32.totalorder %s712_s0, %s712_s0 }
  0x30   :  { %p719_p8 = por %p718_p7, %p717_p6 }
  0x32   :  { %p720_p9 = pnand %p719_p8, %p713_p5 }
  0x34   :  { %723 = shalt.err (!%p720_p9)
}
  0x35   :  { %53 = dma.hbm_to_vmem [thread:$0]  %s1060_s3, 64, %s51_s18, [#allocation6]  }
  0x36   :  { %s724_s11 = scalar_lea.hbm %s1061_s4, 64 }
  0x37   :  { %p725_p10 = scmp.ne.s32.totalorder %s1061_s4, %s724_s11  ;;  %p728_p11 = scmp.lt.u32.totalorder %s724_s11, %s1061_s4 }
  0x39   :  { %p730_p12 = pnand %p728_p11, %p725_p10 }
  0x3b   :  { %733 = shalt.err (!%p730_p12)
}
  0x3c   :  { %s734_s14 = scalar_lea.vmem %s61_s20, 64  ;;  %p739_p0 = scmp.lt.s32.totalorder %s61_s20, %s61_s20 }
  0x3d   :  { %p735_p13 = scmp.ne.s32.totalorder %s61_s20, %s734_s14  ;;  %p740_p1 = scmp.lt.s32.totalorder %s734_s14, %s734_s14 }
  0x3f   :  { %p741_p2 = por %p740_p1, %p739_p0 }
  0x41   :  { %p742_p3 = pnand %p741_p2, %p735_p13 }
  0x43   :  { %745 = shalt.err (!%p742_p3)
}
  0x44   :  { %63 = dma.hbm_to_vmem [thread:$0]  %s1061_s4, 64, %s61_s20, [#allocation9]  }
  0x45   :  { %834 = dma.done.wait [#allocation3], 128  }
  0x46   :  { %835 = vsyncadd [#allocation3], 4294967168 }
  0x47   :  { %836 = dma.done.wait [#allocation6], 192  }
  0x48   :  { %837 = vsyncadd [#allocation6], 4294967104 }
  0x49   :  { %838 = dma.done.wait [#allocation9], 64  }
  0x4a   :  { %839 = vsyncadd [#allocation9], 4294967232  ;;  %v95_v0 = vld [vmem:[%s1062_s5] sm:$0x7]  ;;  %v85_v1 = vld [vmem:[#allocation8] sm:$0x7]  ;;  %v240_v17 = vlaneseq }
  0x4b   :  { %v96_v2 = vmin.f32 %v95_v0, 20.0  ;;  %v86_v3 = vmin.f32 %v85_v1, 20.0  ;;  %v969_v10 = vld [vmem:[%s1063_s6] sm:$0xff]  ;;  %vm97_vm0 = vcmp.gt.f32.partialorder %v95_v0, 20.0  ;;  %vm87_vm1 = vcmp.gt.f32.partialorder %v85_v1, 20.0  ;;  %s852_s21 = smov 64  }
  0x4c   :  { %v250_v11 = vsub.f32 1.0, %v969_v10  ;;  %v972_v21 = vshrl.u32 %v240_v17, 7  ;;  %v243_v22 = vand.u32 127, %v240_v17  ;;  %vm258_vm3 = vcmask 1045504   ;;  %v83_v30 = vld [vmem:[#allocation7] sm:$0x7] }
  0x4d   :  { %v98_v4 = vmul.f32 1.442695, %v96_v2  ;;  %v88_v5 = vmul.f32 1.442695, %v86_v3  ;;  %v850_v26 = vmov 0.0   ;;  %vm851_vm4 = vmmov 0  }
  0x4e   :  { %v251_v12 = vmax.f32 %v250_v11, 1e-30  ;;  %vm244_vm2 = vcmp.lt.s32.totalorder %v972_v21, %v243_v22  ;;  %607 = vmatprep.subr.mxu1 %v850_v26  ;;  %602 = vmatprep.subr.mxu0 %v850_v26  ;;  %vm254_vm5 = vcmask 48128   ;;  %v82_v31 = vld [vmem:[%s1059_s2] sm:$0x7]  ;;  %v139_v32 = vmul.f32 -2.0, %v83_v30 }
  0x4f   :  { %636 = vpow2.f32 %v98_v4  ;;  %v589_v27 = vsel %vm244_vm2, 1.0, %v850_v26  ;;  %609 = vmatprep.mubr.msk.f32.mxu1 %vm851_vm4, %v850_v26  ;;  %604 = vmatprep.mubr.msk.f32.mxu0 %vm851_vm4, %v850_v26  ;;  %v158_v33 = vmul.f32 %v83_v30, %v83_v30  ;;  %v131_v34 = vmul.f32 -2.0, %v82_v31  ;;  %v81_v41 = vld [vmem:[#allocation5] sm:$0xff]  ;;  %s853_s2 = smov 32   ;;  %s854_s22 = smov 96   ;;  %v80_v44 = vld [vmem:[#allocation2] sm:$0xff] }
  0x50   :  { %638 = vpow2.f32 %v88_v5  ;;  %608 = vmatpush3.msk.msra.mxu1 %vm258_vm3, %v589_v27  ;;  %v156_v35 = vmul.f32 %v82_v31, %v82_v31  ;;  %vm154_vm6 = vcmask 1042432   ;;  %v112_v45 = vmul.f32 %v81_v41, %v81_v41  ;;  %s856_s23 = smov [#allocation11]   ;;  %s857_s25 = smov [#allocation10]  }
  0x51   :  { %612 = vmatprep.subr.mxu1 %v850_v26  ;;  %vm125_vm7 = vcmask 261120   ;;  %v855_v47 = vmov 1.0   ;;  %vm127_vm8 = vcmask 523264   ;;  %vm129_vm9 = vcmask 785408   ;;  %s545_s24 = sshll.u32 %s856_s23, 4  ;;  %s535_s26 = sshll.u32 %s857_s25, 4  ;;  %s546_s24 = int_to_ptr.vmem [resolvable:$true] %s545_s24  ;;  %s536_s26 = int_to_ptr.vmem [resolvable:$true] %s535_s26 }
  0x52   :  { %v111_v50 = vmul.f32 %v80_v44, %v80_v44  ;;  %vm436_vm10 = vcmask 0   ;;  %vm525_vm11 = vcmask 40960   ;;  %s746_s27 = scalar_lea.vmem %s546_s24, 128  ;;  %p751_p5 = scmp.lt.s32.totalorder %s546_s24, %s546_s24 }
  0x53   :  { %p747_p4 = scmp.ne.s32.totalorder %s546_s24, %s746_s27  ;;  %p752_p6 = scmp.lt.s32.totalorder %s746_s27, %s746_s27 }
  0x55   :  { %p753_p7 = por %p752_p6, %p751_p5 }
  0x57   :  { %p754_p8 = pnand %p753_p7, %p747_p4 }
  0x59   :  { %v637_v6 = vpop.eup %636 }
  0x5a   :  { %v639_v7 = vpop.eup %638  ;;  %v100_v8 = vadd.f32 1.0, %v637_v6 }
  0x5b   :  { %v90_v9 = vadd.f32 1.0, %v639_v7 }
  0x5c   :  { %640 = vlog2.f32 %v100_v8  ;;  %v336_v8 = vsub.s32 0, %v972_v21 }
  0x5d   :  { %642 = vlog2.f32 %v90_v9 }
  0x5e   :  { %644 = vlog2.f32 %v251_v12 }
  0x66   :  { %v641_v13 = vpop.eup %640 }
  0x67   :  { %v643_v14 = vpop.eup %642  ;;  %v102_v15 = vmul.f32 0.6931472, %v641_v13 }
  0x68   :  { %v92_v16 = vmul.f32 0.6931472, %v643_v14  ;;  %v645_v28 = vpop.eup %644 }
  0x69   :  { %v103_v18 = vsel %vm97_vm0, %v95_v0, %v102_v15  ;;  %v253_v29 = vmul.f32 0.6931472, %v645_v28  ;;  %v247_v0 = vmax.f32 %v969_v10, 1e-30 }
  0x6a   :  { %v104_v19 = vmax.f32 %v103_v18, 1e-15  ;;  %v93_v20 = vsel %vm87_vm1, %v85_v1, %v92_v16 }
  0x6b   :  { %v94_v23 = vmax.f32 %v93_v20, 1e-15  ;;  %610 = vmatmul.mubr.msk.f32.vlgmr.msra.gmra.mrb[0].mxu1 %vm254_vm5, %v253_v29 }
  0x6c   :  { %v108_v24 = vmul.f32 %v104_v19, %v104_v19  ;;  %614 = vmatprep.mubr.msk.f32.mxu1 %vm851_vm4, %v850_v26 }
  0x6d   :  { %v105_v25 = vmul.f32 %v94_v23, %v94_v23 }
  0x6e   :  { %646 = vrcp.f32 %v108_v24 }
  0x6f   :  { %648 = vrcp.f32 %v105_v25 }
  0x70   :  { %650 = vlog2.f32 %v247_v0 }
  0x78   :  { %v647_v36 = vpop.eup %646 }
  0x79   :  { %v649_v37 = vpop.eup %648  ;;  %142 = vrot.lane.b32.xlu0 %v647_v36, %s852_s21  ;;  %v140_v38 = vmul.f32 %v647_v36, %v139_v32  ;;  %v159_v39 = vmul.f32 %v647_v36, %v158_v33 }
  0x7a   :  { %v132_v40 = vmul.f32 %v649_v37, %v131_v34  ;;  %v157_v42 = vmul.f32 %v649_v37, %v156_v35  ;;  %v651_v1 = vpop.eup %650 }
  0x7b   :  { %v161_v43 = vrot.slane %v159_v39, 5  ;;  %v249_v2 = vmul.f32 0.6931472, %v651_v1 }
  0x7c   :  { %134 = vrot.lane.b32.xlu1 %v132_v40, %s853_s2 }
  0x7d   :  { %146 = vrot.lane.b32.xlu0 %v140_v38, %s854_s22  ;;  %v163_v46 = vsel %vm154_vm6, %v157_v42, %v161_v43 }
  0x7e   :  { %603 = vmatpush3.xpose.msk.msra.mxu0 %vm125_vm7, %v163_v46 }
  0x7f   :  { %617 = vmatprep.subr.mxu0 %v850_v26 }
  0x80   :  { %114 = vrot.lane.b32.xlu1 %v80_v44, %s853_s2 }
  0x81   :  { %118 = vrot.lane.b32.xlu0 %v112_v45, %s852_s21  ;;  %605 = vmatmul.mubr.msk.f32.vlgmr.msra.gmra.mrb[0].mxu0 %vm125_vm7, %v855_v47 }
  0x82   :  { %618 = vmatpush3.msk.msra.mxu0 %vm258_vm3, %v589_v27  ;;  %619 = vmatprep.mubr.msk.f32.mxu0 %vm851_vm4, %v850_v26 }
  0x84   :  { %122 = vrot.lane.b32.xlu1 %v81_v41, %s854_s22 }
  0xeb   :  { %v143_v48 = vpop.permute.xlu0 %142 }
  0xec   :  { %v149_v51 = vsel %vm127_vm8, 0.0, %v143_v48 }
  0xee   :  { %v135_v49 = vpop.permute.xlu1 %134 }
  0xef   :  { %v137_v52 = vsel %vm125_vm7, %v649_v37, %v135_v49  ;;  %v147_v53 = vpop.permute.xlu0 %146 }
  0xf0   :  { %v150_v54 = vsel %vm129_vm9, %v149_v51, %v147_v53  ;;  %v138_v56 = vsel %vm127_vm8, %v137_v52, 0.0 }
  0xf1   :  { %v152_v55 = vrot.slane %v150_v54, 5 }
  0xf2   :  { %v115_v57 = vpop.permute.xlu1 %114 }
  0xf3   :  { %v126_v58 = vsel %vm125_vm7, %v111_v50, %v115_v57  ;;  %v119_v59 = vpop.permute.xlu0 %118  ;;  %v155_v60 = vsel %vm154_vm6, %v138_v56, %v152_v55 }
  0xf4   :  { %v128_v61 = vsel %vm127_vm8, %v126_v58, %v119_v59  ;;  %613 = vmatpush3.xpose.msra.mxu1 %v155_v60 }
  0xf6   :  { %v123_v62 = vpop.permute.xlu1 %122 }
  0xf7   :  { %v130_v63 = vsel %vm129_vm9, %v128_v61, %v123_v62 }
  0xf8   :  { %615 = vmatmul.mubr.f32.vlgmr.msra.gmra.mrb[2].mxu1 %v130_v63 }
 0x13e   :  { %v328_v3 = vpop.f32.mrb[0].mxu1 }
 0x13f   :  { %v332_v4 = vadd.f32 %v328_v3, %v249_v2  ;;  %v611_v5 = vpop.f32.mrb[1].mxu1 }
 0x141   :  { %v333_v15 = vmax.f32 %v332_v4, -34.538776 }
 0x154   :  { %v236_v6 = vpop.f32.mrb[0].mxu0 }
 0x155   :  { %v606_v7 = vpop.f32.mrb[1].mxu0  ;;  %v337_v9 = vrot.slane %v236_v6, %v336_v8 }
 0x1cb   :  { %v404_v11 = vpop.f32.mrb[2].mxu1 }
 0x1cc   :  { %v405_v12 = vadd.f32 %v404_v11, %v337_v9  ;;  %v616_v13 = vpop.f32.mrb[3].mxu1 }
 0x1ce   :  { %v408_v14 = vmul.f32 -0.5, %v405_v12 }
 0x1d0   :  { %v409_v16 = vadd.f32 16.0, %v408_v14 }
 0x1d2   :  { %v410_v17 = vadd.f32 %v409_v16, %v333_v15 }
 0x1d4   :  { %v411_v10 = vsel %vm254_vm5, %v410_v17, -inf }
 0x1d5   :  { %412 = vmax.xlane.f32.xlu0 %v411_v10 }
 0x262   :  { %v413_v18 = vpop.xlane.xlu0 %412 }
 0x263   :  { %v414_v19 = vsub.f32 %v410_v17, %v413_v18 }
 0x265   :  { %v415_v20 = vmul.f32 1.442695, %v414_v19 }
 0x267   :  { %652 = vpow2.f32 %v415_v20 }
 0x271   :  { %v653_v22 = vpop.eup %652 }
 0x272   :  { %v417_v23 = vsel %vm254_vm5, %v653_v22, 0.0 }
 0x273   :  { %418 = vadd.xlane.f32.xlu1 %v417_v23 }
 0x300   :  { %v419_v21 = vpop.xlane.xlu1 %418 }
 0x301   :  { %654 = vrcp.f32 %v419_v21 }
 0x302   :  { %656 = vlog2.f32 %v419_v21 }
 0x30b   :  { %v655_v24 = vpop.eup %654 }
 0x30c   :  { %v657_v25 = vpop.eup %656  ;;  %v421_v26 = vmul.f32 %v655_v24, %v653_v22 }
 0x30d   :  { %v425_v27 = vmul.f32 0.6931472, %v657_v25 }
 0x30e   :  { %v422_v28 = vmax.f32 %v421_v26, 1e-15 }
 0x30f   :  { %v426_v29 = vadd.f32 %v425_v27, %v413_v18 }
 0x310   :  { %v438_v30 = vsel %vm254_vm5, %v422_v28, 0.0  ;;  %423 = vst.msk [vmem:[#allocation11] sm:$0xff] %vm254_vm5, %v422_v28 }
 0x311   :  { %v427_v31 = vrot.slane %v426_v29, 4  ;;  %v439_v32 = vrot.slane %v438_v30, 4 }
 0x313   :  { %v428_v33 = vadd.f32 %v427_v31, %v426_v29  ;;  %v440_v34 = vadd.f32 %v439_v32, %v438_v30 }
 0x315   :  { %v429_v35 = vrot.slane %v428_v33, 2  ;;  %v441_v36 = vrot.slane %v440_v34, 2 }
 0x317   :  { %v442_v37 = vadd.f32 %v441_v36, %v440_v34  ;;  %v430_v38 = vadd.f32 %v429_v35, %v428_v33 }
 0x319   :  { %v443_v39 = vrot.slane %v442_v37, 1  ;;  %v431_v40 = vrot.slane %v430_v38, 1 }
 0x31b   :  { %v444_v41 = vadd.f32 %v443_v39, %v442_v37  ;;  %v432_v42 = vadd.f32 %v431_v40, %v430_v38 }
 0x31d   :  { %v999_v43 = vmul.f32 0.125, %v444_v41  ;;  %v434_v44 = vmul.f32 0.125, %v432_v42 }
 0x31f   :  { %620 = vmatmul.mubr.msk.f32.vlgmr.msra.gmra.mrb[2].mxu0 %vm254_vm5, %v999_v43  ;;  %v519_v45 = vsel %vm254_vm5, %v999_v43, 0.0  ;;  %v435_v46 = vsub.f32 0.0, %v434_v44  ;;  %v524_v47 = vadd.f32 1.0, %v999_v43 }
 0x320   :  { %520 = vadd.xlane.f32.xlu0 %v519_v45 }
 0x321   :  { %437 = vst.msk [vmem:[#allocation10] sm:$0x1] %vm436_vm10, %v435_v46 }
 0x322   :  { %526 = vst.msk [vmem:[#allocation13] sm:$0x1] %vm525_vm11, %v524_v47 }
 0x323   :  { %757 = shalt.err (!%p754_p8)
}
 0x324   :  { %s758_s28 = scalar_lea.hbm %s1065_s8, 128 }
 0x325   :  { %p759_p9 = scmp.ne.s32.totalorder %s1065_s8, %s758_s28  ;;  %p762_p10 = scmp.lt.u32.totalorder %s758_s28, %s1065_s8 }
 0x327   :  { %p764_p11 = pnand %p762_p10, %p759_p9 }
 0x329   :  { %767 = shalt.err (!%p764_p11)
}
 0x32a   :  { %548 = dma.vmem_to_hbm [thread:$0]  %s546_s24, 128, %s1065_s8, [#allocation12]  }
 0x32b   :  { %s768_s1 = scalar_lea.vmem %s536_s26, 16  ;;  %s772_s14 = scalar_lea.vmem %s536_s26, 32 }
 0x32c   :  { %p769_p12 = scmp.ne.s32.totalorder %s536_s26, %s768_s1  ;;  %p773_p13 = scmp.lt.s32.totalorder %s536_s26, %s536_s26 }
 0x32d   :  { %p774_p0 = scmp.lt.s32.totalorder %s772_s14, %s768_s1 }
 0x32f   :  { %p775_p1 = por %p774_p0, %p773_p13 }
 0x331   :  { %p776_p2 = pnand %p775_p1, %p769_p12 }
 0x333   :  { %779 = shalt.err (!%p776_p2)
}
 0x334   :  { %s780_s18 = scalar_lea.hbm %s1064_s7, 16 }
 0x335   :  { %p781_p3 = scmp.ne.s32.totalorder %s1064_s7, %s780_s18  ;;  %p784_p4 = scmp.lt.u32.totalorder %s780_s18, %s1064_s7 }
 0x337   :  { %p786_p5 = pnand %p784_p4, %p781_p3 }
 0x339   :  { %789 = shalt.err (!%p786_p5)
}
 0x33a   :  { %538 = dma.vmem_to_hbm [thread:$0]  %s536_s26, 16, %s1064_s7, [#allocation4]  }
 0x33b   :  { %s858_s21 = smov [#allocation13]  }
 0x33c   :  { %s555_s2 = sshll.u32 %s858_s21, 4  ;;  %s556_s2 = int_to_ptr.vmem [resolvable:$true] %s555_s2 }
 0x33d   :  { %s790_s22 = scalar_lea.vmem %s556_s2, 16  ;;  %s794_s23 = scalar_lea.vmem %s556_s2, 32 }
 0x33e   :  { %p791_p6 = scmp.ne.s32.totalorder %s556_s2, %s790_s22  ;;  %p795_p7 = scmp.lt.s32.totalorder %s556_s2, %s556_s2 }
 0x33f   :  { %p796_p8 = scmp.lt.s32.totalorder %s794_s23, %s790_s22 }
 0x341   :  { %p797_p9 = por %p796_p8, %p795_p7 }
 0x343   :  { %p798_p10 = pnand %p797_p9, %p791_p6 }
 0x345   :  { %801 = shalt.err (!%p798_p10)
}
 0x346   :  { %s802_s27 = scalar_lea.hbm %s1066_s9, 16 }
 0x347   :  { %p803_p11 = scmp.ne.s32.totalorder %s1066_s9, %s802_s27  ;;  %p806_p12 = scmp.lt.u32.totalorder %s802_s27, %s1066_s9 }
 0x349   :  { %p808_p13 = pnand %p806_p12, %p803_p11 }
 0x34b   :  { %811 = shalt.err (!%p808_p13)
}
 0x34c   :  { %558 = dma.vmem_to_hbm [thread:$0]  %s556_s2, 16, %s1066_s9, [#allocation12]  }
 0x34d   :  { %s859_s30 = smov [#allocation14]  }
 0x34e   :  { %s565_s11 = sshll.u32 %s859_s30, 4  ;;  %s566_s11 = int_to_ptr.vmem [resolvable:$true] %s565_s11 }
 0x34f   :  { %s812_s12 = scalar_lea.vmem %s566_s11, 16  ;;  %s816_s13 = scalar_lea.vmem %s566_s11, 32 }
 0x350   :  { %p813_p0 = scmp.ne.s32.totalorder %s566_s11, %s812_s12  ;;  %p817_p1 = scmp.lt.s32.totalorder %s566_s11, %s566_s11 }
 0x351   :  { %p818_p2 = scmp.lt.s32.totalorder %s816_s13, %s812_s12 }
 0x353   :  { %p819_p3 = por %p818_p2, %p817_p1 }
 0x355   :  { %p820_p4 = pnand %p819_p3, %p813_p0 }
 0x3ad   :  { %v521_v48 = vpop.xlane.xlu0 %520 }
 0x3f2   :  { %v515_v49 = vpop.f32.mrb[2].mxu0 }
 0x3f3   :  { %v522_v50 = vsub.f32 %v521_v48, %v515_v49  ;;  %v621_v51 = vpop.f32.mrb[3].mxu0 }
 0x3f5   :  { %v523_v52 = vsub.f32 %v522_v50, %v999_v43 }
 0x3f7   :  { %v527_v53 = vadd.f32 1.0, %v523_v52 }
 0x3f9   :  { %528 = vst.msk [vmem:[#allocation14] sm:$0x1] %vm525_vm11, %v527_v53 }
 0x3fa   :  { %823 = shalt.err (!%p820_p4)
}
 0x3fb   :  { %s824_s1 = scalar_lea.hbm %s1067_s10, 16 }
 0x3fc   :  { %p825_p5 = scmp.ne.s32.totalorder %s1067_s10, %s824_s1  ;;  %p828_p6 = scmp.lt.u32.totalorder %s824_s1, %s1067_s10 }
 0x3fe   :  { %p830_p7 = pnand %p828_p6, %p825_p5 }
 0x400   :  { %833 = shalt.err (!%p830_p7)
}
 0x401   :  { %568 = dma.vmem_to_hbm [thread:$0]  %s566_s11, 16, %s1067_s10, [#allocation15]  }
 0x402   :  { %840 = dma.done.wait [#allocation4], 16  }
 0x403   :  { %841 = vsyncadd [#allocation4], 4294967280 }
 0x404   :  { %842 = dma.done.wait [#allocation12], 144  }
 0x405   :  { %843 = vsyncadd [#allocation12], 4294967152 }
 0x406   :  { %844 = dma.done.wait [#allocation15], 16  }
 0x407   :  { %845 = vsyncadd [#allocation15], 4294967280 }
 0x408   :  { %581 = vsyncpa [#allocation3], 1 }
 0x409   :  { %582 = vsyncpa [#allocation6], 1 }
 0x40a   :  { %583 = vsyncpa [#allocation9], 1 }
 0x40b   :  { %584 = vsyncpa [#allocation4], 1 }
 0x40c   :  { %585 = vsyncpa [#allocation12], 1 }
 0x40d   :  { %586 = vsyncpa [#allocation15], 1 }

</bundles_post_ra>
